<compile_context>
chip_gen: v5e
topology: v5e:2x2
jax: 0.10.0
libtpu: 0.0.40
codegen_flags: <defaults>
</compile_context>

<pallas_src>
import functools

import jax
import jax.numpy as jnp
from jax import lax
from jax.experimental import pallas as pl
from jax.experimental.pallas import tpu as pltpu

HIDDEN = 24   # hidden width of both Linear(..., 24) layers in the PyTorch module
LANE = 128    # TPU lane width


def _round_up(x, m):
    return (x + m - 1) // m * m


def _slab_offsets(n_states):
    """128-lane-aligned column offsets of each sub-tensor inside the packed slab."""
    ns_pad = _round_up(max(n_states, 1), LANE)
    off_b1 = ns_pad
    off_w2 = ns_pad + LANE
    off_b2 = ns_pad + 2 * LANE
    off_w3 = ns_pad + 3 * LANE
    off_b3 = ns_pad + 4 * LANE
    width = ns_pad + 5 * LANE
    return off_b1, off_w2, off_b2, off_w3, off_b3, width


def critic_kernel(n_states, x_ref, p_ref, o_ref):
    """One batch tile of the Critic MLP.

    x_ref : (tile_b, n_states)   native (batch-major) layout, streamed per grid step
    p_ref : (HIDDEN, width)      packed weights/biases, 128-lane aligned, VMEM-resident
    o_ref : (1, tile_b)          critic value per batch element (lane-dense store)
    """
    off_b1, off_w2, off_b2, off_w3, off_b3, _ = _slab_offsets(n_states)

    x = x_ref[...]                                    # (tb, ns)
    w1 = p_ref[:, 0:n_states]                         # (24, ns)  lin1 weight (out, in)
    b1 = p_ref[:, off_b1:off_b1 + 1]                  # (24, 1)
    w2 = p_ref[:, off_w2:off_w2 + HIDDEN]             # (24, 24)  lin2 weight
    b2 = p_ref[:, off_b2:off_b2 + 1]                  # (24, 1)
    w3 = p_ref[:, off_w3:off_w3 + 1]                  # (24, 1)   final_lin weight (column)
    b3 = p_ref[0:1, off_b3:off_b3 + 1]                # (1, 1)    final_lin bias

    # Layer 1 on the MXU: contract x's minor (feature) axis -> h1 = w1 @ x^T without a
    # physical transpose of the batch.  Result is feature-major (24, tb): batch on lanes
    # for the rest of the kernel.
    h1 = lax.dot_general(w1, x, dimension_numbers=(((1,), (1,)), ((), ())),
                         preferred_element_type=jnp.float32)       # (24, tb)
    h1 = jnp.maximum(h1 + b1, 0.0)                                 # ReLU

    # Layer 2 on the MXU: (24, 24) @ (24, tb), N = tile_b lanes keeps it busy.
    h2 = jnp.dot(w2, h1, preferred_element_type=jnp.float32)       # (24, tb)
    h2 = jnp.maximum(h2 + b2, 0.0)                                 # ReLU

    # Final 24 -> 1 head on the VPU/XLU: broadcast multiply + sublane reduce.
    # Keeps the result lane-dense (1, tb); no 1-lane MXU matmul.
    out = jnp.sum(h2 * w3, axis=0, keepdims=True) + b3             # (1, tb)
    o_ref[...] = out.astype(o_ref.dtype)


def pack_params(params, n_states):
    """Pack all weights/biases (PyTorch (out, in) layout) into one lane-aligned f32 slab."""
    w1, b1, w2, b2, w3, b3 = params
    off_b1, off_w2, off_b2, off_w3, off_b3, width = _slab_offsets(n_states)
    slab = jnp.zeros((HIDDEN, width), jnp.float32)
    slab = slab.at[:, 0:n_states].set(w1)                          # (24, ns)
    slab = slab.at[:, off_b1].set(b1)                              # (24,)
    slab = slab.at[:, off_w2:off_w2 + HIDDEN].set(w2)              # (24, 24)
    slab = slab.at[:, off_b2].set(b2)                              # (24,)
    slab = slab.at[:, off_w3].set(w3.reshape(HIDDEN))              # (24,)
    slab = slab.at[0, off_b3].set(b3[0])                           # scalar
    return slab


def _pick_tile_b(B, tile_b_max=8192):
    """Batch tile: big enough to amortize per-step overhead, >=2 grid steps when possible
    (v7x megacore), multiple of 128 lanes when tiling, capped so VMEM stays ~<12 MiB."""
    if B <= 2 * LANE:
        return B                                      # single full-extent tile
    return min(tile_b_max, _round_up((B + 1) // 2, LANE))


def critic_forward(x, packed_params, n_states, tile_b=None):
    """x: (B, n_states) float32  ->  (B, 1) float32 critic values."""
    B = x.shape[0]
    tb = _pick_tile_b(B) if tile_b is None else min(tile_b, B)
    nb = pl.cdiv(B, tb)                               # ragged last tile masked by Pallas

    kernel = functools.partial(critic_kernel, n_states)
    out = pl.pallas_call(
        kernel,
        out_shape=jax.ShapeDtypeStruct((1, B), jnp.float32),
        grid=(nb,),
        in_specs=[
            pl.BlockSpec((tb, n_states), lambda i: (i, 0)),        # native-layout x tiles
            pl.BlockSpec(packed_params.shape, lambda i: (0, 0)),   # weights: fetched once
        ],
        out_specs=pl.BlockSpec((1, tb), lambda i: (0, i)),         # lane-dense output
        compiler_params=pltpu.CompilerParams(
            dimension_semantics=("parallel",),        # shard batch tiles across TCs (v7x)
            vmem_limit_bytes=32 * 1024 * 1024,        # >= usage on all generations
        ),
    )(x, packed_params)
    # (1, B) -> (B, 1): same flat order, tiny (B*4 bytes) metadata-ish reshape.
    return out.reshape(B, 1)


def init_params(key, n_states):
    """PyTorch nn.Linear default init: U(-1/sqrt(fan_in), 1/sqrt(fan_in)), W stored (out, in)."""
    def linear(k, fan_in, fan_out):
        kw, kb = jax.random.split(k)
        bound = 1.0 / jnp.sqrt(jnp.float32(fan_in))
        w = jax.random.uniform(kw, (fan_out, fan_in), jnp.float32, -bound, bound)
        b = jax.random.uniform(kb, (fan_out,), jnp.float32, -bound, bound)
        return w, b

    k1, k2, k3 = jax.random.split(key, 3)
    w1, b1 = linear(k1, n_states, HIDDEN)
    w2, b2 = linear(k2, HIDDEN, HIDDEN)
    w3, b3 = linear(k3, HIDDEN, 1)
    return (w1, b1, w2, b2, w3, b3)


def reference_forward(x, params):
    w1, b1, w2, b2, w3, b3 = params
    h1 = jnp.maximum(x @ w1.T + b1, 0.0)
    h2 = jnp.maximum(h1 @ w2.T + b2, 0.0)
    return h2 @ w3.T + b3


if __name__ == "__main__":
    key = jax.random.PRNGKey(0)
    n_states = 4

    kx, kp, kx2 = jax.random.split(key, 3)
    params = init_params(kp, n_states)
    packed = pack_params(params, n_states)

    # Small single-tile case (typical RL critic call): grid=(1,), block == full array.
    x = jax.random.normal(kx, (8, n_states), jnp.float32)
    out = critic_forward(x, packed, n_states)
    jax.block_until_ready(out)
    ref = reference_forward(x, params)
    assert out.shape == (8, 1)
    assert jnp.allclose(out, ref, atol=1e-5, rtol=1e-5), "mismatch vs reference (B=8)"

    # Larger batch: exercises 2 parallel grid steps (tile_b=256) + ragged masked last tile.
    x2 = jax.random.normal(kx2, (300, n_states), jnp.float32)
    out2 = critic_forward(x2, packed, n_states)
    jax.block_until_ready(out2)
    ref2 = reference_forward(x2, params)
    assert out2.shape == (300, 1)
    assert jnp.allclose(out2, ref2, atol=1e-5, rtol=1e-5), "mismatch vs reference (B=300)"

    print("KERNEL_OK")
</pallas_src>

<mosaic_0001>
module attributes {stable_mosaic.version = 11 : i64} {
  func.func @critic_kernel(%arg0: i32, %arg1: memref<8x4xf32, #tpu.memory_space<vmem>>, %arg2: memref<24x768xf32, #tpu.memory_space<vmem>>, %arg3: memref<1x8xf32, #tpu.memory_space<vmem>>) attributes {dimension_semantics = [#tpu.dimension_semantics<parallel>], iteration_bounds = array<i64: 1>, scalar_prefetch = 0 : i64, scratch_operands = 0 : i64, tpu.core_type = #tpu.core_type<tc>, window_params = [{transform_indices = @transform_0, window_bounds = array<i64: 8, 4>}, {pipeline_mode = #tpu.pipeline_mode<synchronous>, transform_indices = @transform_1, window_bounds = array<i64: 24, 768>}, {transform_indices = @transform_2, window_bounds = array<i64: 1, 8>}]} {
    %c0 = arith.constant 0 : index
    %c0_0 = arith.constant 0 : index
    %0 = vector.load %arg1[%c0, %c0_0] : memref<8x4xf32, #tpu.memory_space<vmem>>, vector<8x4xf32>
    %c0_1 = arith.constant 0 : index
    %c0_2 = arith.constant 0 : index
    %1 = vector.load %arg2[%c0_1, %c0_2] : memref<24x768xf32, #tpu.memory_space<vmem>>, vector<24x4xf32>
    %c0_3 = arith.constant 0 : index
    %c128 = arith.constant 128 : index
    %2 = vector.load %arg2[%c0_3, %c128] : memref<24x768xf32, #tpu.memory_space<vmem>>, vector<24x1xf32>
    %c0_4 = arith.constant 0 : index
    %c256 = arith.constant 256 : index
    %3 = vector.load %arg2[%c0_4, %c256] : memref<24x768xf32, #tpu.memory_space<vmem>>, vector<24x24xf32>
    %c0_5 = arith.constant 0 : index
    %c384 = arith.constant 384 : index
    %4 = vector.load %arg2[%c0_5, %c384] : memref<24x768xf32, #tpu.memory_space<vmem>>, vector<24x1xf32>
    %c0_6 = arith.constant 0 : index
    %c512 = arith.constant 512 : index
    %5 = vector.load %arg2[%c0_6, %c512] : memref<24x768xf32, #tpu.memory_space<vmem>>, vector<24x1xf32>
    %c0_7 = arith.constant 0 : index
    %c640 = arith.constant 640 : index
    %6 = vector.load %arg2[%c0_7, %c640] : memref<24x768xf32, #tpu.memory_space<vmem>>, vector<1x1xf32>
    %cst = arith.constant dense<0.000000e+00> : vector<24x8xf32>
    %7 = tpu.matmul %1, %0, %cst {dimension_numbers = #tpu.dot_dimension_numbers<[1], [1], [0], [0], [0, 0, 1, 0], [], []>} : vector<24x4xf32>, vector<8x4xf32>, vector<24x8xf32> -> vector<24x8xf32>
    %8 = vector.broadcast %2 : vector<24x1xf32> to vector<24x8xf32>
    %9 = arith.addf %7, %8 : vector<24x8xf32>
    %cst_8 = arith.constant 0.000000e+00 : f32
    %10 = vector.broadcast %cst_8 : f32 to vector<24x8xf32>
    %11 = arith.maximumf %9, %10 : vector<24x8xf32>
    %cst_9 = arith.constant dense<0.000000e+00> : vector<24x8xf32>
    %12 = tpu.matmul %3, %11, %cst_9 {dimension_numbers = #tpu.dot_dimension_numbers<[1], [0], [0], [1], [0, 0, 1, 1], [], []>} : vector<24x24xf32>, vector<24x8xf32>, vector<24x8xf32> -> vector<24x8xf32>
    %13 = vector.broadcast %4 : vector<24x1xf32> to vector<24x8xf32>
    %14 = arith.addf %12, %13 : vector<24x8xf32>
    %cst_10 = arith.constant 0.000000e+00 : f32
    %15 = vector.broadcast %cst_10 : f32 to vector<24x8xf32>
    %16 = arith.maximumf %14, %15 : vector<24x8xf32>
    %17 = vector.broadcast %5 : vector<24x1xf32> to vector<24x8xf32>
    %18 = arith.mulf %16, %17 : vector<24x8xf32>
    %cst_11 = arith.constant dense<0.000000e+00> : vector<8xf32>
    %19 = vector.multi_reduction <add>, %18, %cst_11 [0] : vector<24x8xf32> to vector<8xf32>
    %20 = vector.shape_cast %19 : vector<8xf32> to vector<1x8xf32>
    %21 = vector.broadcast %6 : vector<1x1xf32> to vector<1x8xf32>
    %22 = arith.addf %20, %21 : vector<1x8xf32>
    %c0_12 = arith.constant 0 : index
    %c0_13 = arith.constant 0 : index
    %23 = vector.load %arg3[%c0_12, %c0_13] : memref<1x8xf32, #tpu.memory_space<vmem>>, vector<1x8xf32>
    tpu.vector_store %arg3[%c0_12, %c0_13], %22 {strides = array<i32>} : memref<1x8xf32, #tpu.memory_space<vmem>>, vector<1x8xf32>,
    return
  }
  func.func @transform_0(%arg0: i32) -> (i32, i32) {
    %c0_i32 = arith.constant 0 : i32
    %c0_i32_0 = arith.constant 0 : i32
    return %arg0, %c0_i32 : i32, i32
  }
  func.func @transform_1(%arg0: i32) -> (i32, i32) {
    %c0_i32 = arith.constant 0 : i32
    %c0_i32_0 = arith.constant 0 : i32
    %c0_i32_1 = arith.constant 0 : i32
    return %c0_i32, %c0_i32_0 : i32, i32
  }
  func.func @transform_2(%arg0: i32) -> (i32, i32) {
    %c0_i32 = arith.constant 0 : i32
    %c0_i32_0 = arith.constant 0 : i32
    return %c0_i32, %arg0 : i32, i32
  }
}

</mosaic_0001>

<bundles_post_ra>
// kernel: tpu_custom_call.1
= control target key start
LH: loop header
LB: loop body
LE: loop exit
PB: predicated region body
PF: predicated region fallthrough
CT: control target
= control target key end

     0   :  { %7 = vsyncpa [#allocation3], 0  ;;  %s319_s0 = inlined_call_operand.vmem [shape: f32[8,4], index: 0, kind: input, shape index: {}]   ;;  %s320_s1 = inlined_call_operand.hbm [shape: f32[24,768], index: 1, kind: input, shape index: {}]   ;;  %s321_s2 = inlined_call_operand.hbm [shape: f32[1,8], index: 2, kind: output, shape index: {}]  }
   0x1   :  { %8 = vsyncpa [#allocation4], 0  ;;  %s15_s11 = sshll.u32 %s320_s1, 4  ;;  %s285_s12 = smov [#allocation2]   ;;  %s16_s11 = int_to_ptr.hbm [resolvable:$true] %s15_s11 }
   0x2   :  { %s17_s13 = sshll.u32 %s285_s12, 4  ;;  %s286_s14 = smov 768   ;;  %s18_s13 = int_to_ptr.vmem [resolvable:$true] %s17_s13 }
   0x3   :  { %s287_s15 = smov 48  }
   0x4   :  { %23 = dma.hbm_to_vmem [thread:$0]  %s16_s11, 2304, %s18_s13, [#allocation3], %s286_s14, %s286_s14, %s287_s15  }
   0x5   :  { %281 = dma.done.wait [#allocation3], 2304  }
   0x6   :  { %282 = vsyncadd [#allocation3], 4294964992  ;;  %v288_v0 = vmov 0   ;;  %vm60_vm0 = vcmask 31744   ;;  %v34_v1 = vld [vmem:[#allocation2 + $0x68] sm:$0xff]  ;;  %v28_v2 = vld [vmem:[%s319_s0] sm:$0xff] }
   0x7   :  { %230 = vset.pattern.permute.xlu0 %v288_v0  ;;  %231 = vset.pattern.permute.xlu1 %v288_v0  ;;  %v30_v3 = vld [vmem:[#allocation2 + $0x30] sm:$0xff]  ;;  %v32_v4 = vld [vmem:[#allocation2 + $0x8] sm:$0xff]  ;;  %v29_v5 = vld [vmem:[#allocation2] sm:$0xff]  ;;  %vm117_vm1 = vcmask 195584   ;;  %vm174_vm2 = vcmask 64512   ;;  %s289_s0 = smov [#allocation5]  }
   0x8   :  { %232 = vset.pattern.permute.xlu2 %v288_v0  ;;  %57 = vperm.xlu0 %230, %v34_v1   ;;  %v33_v6 = vld [vmem:[#allocation2 + $0x38] sm:$0xff]  ;;  %v31_v8 = vld [vmem:[#allocation2 + $0x60] sm:$0xff]  ;;  %v42_v10 = vld [vmem:[#allocation2 + $0x50] sm:$0xff]  ;;  %s199_s1 = sshll.u32 %s289_s0, 4  ;;  %s201_s20 = sshll.u32 %s321_s2, 4  ;;  %vm192_vm3 = vcmask 57344   ;;  %s200_s1 = int_to_ptr.vmem [resolvable:$true] %s199_s1  ;;  %s202_s20 = int_to_ptr.hbm [resolvable:$true] %s201_s20 }
   0x9   :  { %218 = vmatpush.xpose.msk.msra.mxu3 %vm60_vm0, %v28_v2  ;;  %211 = vmatpush.xpose.msk.msra.mxu0 %vm60_vm0, %v28_v2  ;;  %v38_v7 = vld [vmem:[#allocation2 + $0x18] sm:$0xff]  ;;  %v41_v9 = vld [vmem:[#allocation2 + $0x20] sm:$0xff]  ;;  %v44_v11 = vld [vmem:[#allocation2 + $0x28] ss:$0 sm:$0xff] }
   0xa   :  { %47 = vperm.xlu1 %231, %v32_v4   ;;  %v39_v12 = vld [vmem:[#allocation2 + $0x48] sm:$0xff]  ;;  %v40_v13 = vld [vmem:[#allocation2 + $0x78] sm:$0xff]  ;;  %v43_v16 = vld [vmem:[#allocation2 + $0x80] sm:$0xff] }
   0xb   :  { %109 = vperm.xlu2 %232, %v39_v12   ;;  %v35_v27 = vld [vmem:[#allocation2 + $0x10] sm:$0xff]  ;;  %v36_v28 = vld [vmem:[#allocation2 + $0x40] sm:$0xff] }
   0xc   :  { %213 = vmatmul.msk.f32.vlgmr.msra.gmra.mxu3 %vm60_vm0, %v30_v3  ;;  %212 = vmatmul.msk.f32.vlgmr.msra.gmra.mxu0 %vm60_vm0, %v29_v5  ;;  %v37_v29 = vld [vmem:[#allocation2 + $0x70] sm:$0xff] }
  0x10   :  { %52 = vperm.xlu0 %230, %v33_v6  }
  0x12   :  { %104 = vperm.xlu1 %231, %v38_v7  }
  0x13   :  { %114 = vperm.xlu2 %232, %v40_v13  }
  0x14   :  { %214 = vmatmul.msk.f32.gmra.mxu3 %vm60_vm0, %v31_v8 }
  0x18   :  { %158 = vperm.xlu0 %230, %v41_v9  }
  0x1a   :  { %163 = vperm.xlu1 %231, %v42_v10  }
  0x1b   :  { %168 = vperm.xlu2 %232, %v43_v16  }
  0x20   :  { %188 = vperm.xlu0 %230, %v44_v11  }
  0x65   :  { %v110_v30 = vpop.permute.xlu2 %109 }
  0x6d   :  { %v115_v33 = vpop.permute.xlu2 %114 }
  0x75   :  { %v169_v48 = vpop.permute.xlu2 %168 }
  0x7a   :  { %v58_v14 = vpop.permute.xlu0 %57 }
  0x7c   :  { %v48_v18 = vpop.permute.xlu1 %47 }
  0x82   :  { %v53_v19 = vpop.permute.xlu0 %52 }
  0x84   :  { %v105_v31 = vpop.permute.xlu1 %104 }
  0x89   :  { %v90_v17 = vpop.f32.mrf.mxu0 }
  0x8a   :  { %v91_v23 = vadd.f32 %v90_v17, %v48_v18  ;;  %v159_v39 = vpop.permute.xlu0 %158 }
  0x8c   :  { %v99_v26 = vmax.f32 %v91_v23, 0.0  ;;  %v164_v40 = vpop.permute.xlu1 %163 }
  0x8f   :  { %v93_v15 = vpop.f32.mrf.mxu3 }
  0x90   :  { %v94_v21 = vadd.f32 %v93_v15, %v53_v19 }
  0x92   :  { %v100_v25 = vmax.f32 %v94_v21, 0.0  ;;  %v189_v59 = vpop.permute.xlu0 %188 }
  0x97   :  { %v96_v20 = vpop.f32.mrf.mxu3 }
  0x98   :  { %v97_v22 = vadd.f32 %v96_v20, %v58_v14 }
  0x9a   :  { %v101_v24 = vmax.f32 %v97_v22, 0.0 }
  0x9c   :  { %140 = vmatpush.msrb.mxu0 %v101_v24  ;;  %219 = vmatpush.msra.mxu1 %v101_v24 }
  0x9d   :  { %220 = vmatpush.msra.mxu2 %v101_v24 }
  0x9e   :  { %141 = vmatpush.msrb.mxu0 %v100_v25  ;;  %221 = vmatpush.msra.mxu1 %v100_v25 }
  0x9f   :  { %222 = vmatpush.msra.mxu2 %v100_v25 }
  0xa0   :  { %142 = vmatpush.msrb.mxu0 %v99_v26  ;;  %223 = vmatpush.msra.mxu1 %v99_v26 }
  0xa1   :  { %224 = vmatpush.msra.mxu2 %v99_v26  ;;  %215 = vmatmul.msk.f32.vlgmr.msrb.gmra.mxu0 %vm117_vm1, %v35_v27 }
  0xa2   :  { %216 = vmatmul.msk.f32.vlgmr.msra.gmra.mxu1 %vm117_vm1, %v36_v28  ;;  %217 = vmatmul.msk.f32.vlgmr.msra.gmra.mxu2 %vm117_vm1, %v37_v29 }
 0x11e   :  { %v144_v32 = vpop.f32.mrf.mxu0 }
 0x11f   :  { %v145_v34 = vadd.f32 %v144_v32, %v105_v31  ;;  %v147_v35 = vpop.f32.mrf.mxu1 }
 0x120   :  { %v148_v36 = vadd.f32 %v147_v35, %v110_v30 }
 0x121   :  { %v153_v37 = vmax.f32 %v145_v34, 0.0 }
 0x122   :  { %v154_v38 = vmax.f32 %v148_v36, 0.0 }
 0x123   :  { %v171_v41 = vmul.f32 %v159_v39, %v153_v37 }
 0x124   :  { %v172_v42 = vmul.f32 %v164_v40, %v154_v38 }
 0x125   :  { %v150_v43 = vpop.f32.mrf.mxu2  ;;  %v175_v45 = vsel %vm174_vm2, %v171_v41, 0.0 }
 0x126   :  { %v151_v44 = vadd.f32 %v150_v43, %v115_v33  ;;  %v176_v46 = vsel %vm174_vm2, %v172_v42, 0.0 }
 0x127   :  { %v177_v50 = vadd.f32 %v176_v46, %v175_v45 }
 0x128   :  { %v155_v47 = vmax.f32 %v151_v44, 0.0 }
 0x12a   :  { %v173_v49 = vmul.f32 %v169_v48, %v155_v47 }
 0x12c   :  { %v178_v51 = vsel %vm174_vm2, %v173_v49, 0.0 }
 0x12d   :  { %v179_v52 = vadd.f32 %v178_v51, %v177_v50 }
 0x12f   :  { %v180_v53 = vrot.slane %v179_v52, 4 }
 0x131   :  { %v181_v54 = vadd.f32 %v180_v53, %v179_v52 }
 0x133   :  { %v182_v55 = vrot.slane %v181_v54, 2 }
 0x135   :  { %v183_v56 = vadd.f32 %v182_v55, %v181_v54 }
 0x137   :  { %v184_v57 = vrot.slane %v183_v56, 1 }
 0x139   :  { %v185_v58 = vadd.f32 %v184_v57, %v183_v56 }
 0x13b   :  { %v191_v60 = vadd.f32 %v189_v59, %v185_v58 }
 0x13d   :  { %193 = vst.msk [vmem:[#allocation5] sm:$0x1] %vm192_vm3, %v191_v60 }
 0x13e   :  { %204 = dma.vmem_to_hbm [thread:$0]  %s200_s1, 16, %s202_s20, [#allocation4]  }
 0x13f   :  { %283 = dma.done.wait [#allocation4], 16  }
 0x140   :  { %284 = vsyncadd [#allocation4], 4294967280 }
 0x141   :  { %209 = vsyncpa [#allocation3], 1 }
 0x142   :  { %210 = vsyncpa [#allocation4], 1 }

</bundles_post_ra>
